<compile_context>
chip_gen: v7x
topology: tpu7x:2x2x1
jax: 0.10.0
libtpu: 0.0.40
codegen_flags: <defaults>
</compile_context>

<pallas_src>
import math

import jax
import jax.numpy as jnp
from jax.experimental import pallas as pl
from jax.experimental.pallas import tpu as pltpu


def _round_up(x, m):
    return (x + m - 1) // m * m


# ----------------------------------------------------------------------------------
# Kernels.  Scalar-prefetch refs (tile-CSR: kidx flat, kcount) come first, then the
# tiled operands adj (tm,tk), x (tk,in_f), w (in_f,tn), bias (1,tn), then out (tm,tn).
# ----------------------------------------------------------------------------------
def _gcn_xw_first_kernel(kidx_ref, kcnt_ref, adj_ref, x_ref, w_ref, b_ref, o_ref):
    """out[i,j] = bias + sum_k A[i,k] @ (X[k,:] @ W[:,j]).  Best when out_f <= in_f."""
    i = pl.program_id(0)
    k = pl.program_id(2)

    @pl.when(k == 0)
    def _init():
        # Bias applied exactly once per output tile, as the f32 accumulator init.
        o_ref[...] = jnp.broadcast_to(b_ref[...], o_ref.shape).astype(o_ref.dtype)

    # Block-sparse skip: only adjacency tiles that contain an edge contribute.
    @pl.when(k < kcnt_ref[i])
    def _accum():
        s = jnp.dot(x_ref[...], w_ref[...],
                    preferred_element_type=jnp.float32).astype(adj_ref.dtype)
        o_ref[...] += jnp.dot(adj_ref[...], s, preferred_element_type=jnp.float32)


def _gcn_ax_first_kernel(kidx_ref, kcnt_ref, adj_ref, x_ref, w_ref, b_ref, o_ref,
                         acc_ref):
    """acc[i] = sum_k A[i,k] @ X[k,:];  out[i,j] = acc @ W[:,j] + bias.  in_f < out_f."""
    i = pl.program_id(0)
    k = pl.program_id(2)

    @pl.when(k == 0)
    def _init():
        acc_ref[...] = jnp.zeros_like(acc_ref)

    @pl.when(k < kcnt_ref[i])
    def _accum():
        acc_ref[...] += jnp.dot(adj_ref[...], x_ref[...],
                                preferred_element_type=jnp.float32)

    @pl.when(k == pl.num_programs(2) - 1)
    def _epilogue():
        ax = acc_ref[...].astype(w_ref.dtype)
        o_ref[...] = (jnp.dot(ax, w_ref[...], preferred_element_type=jnp.float32)
                      + b_ref[...]).astype(o_ref.dtype)


def graph_convolution(
    x,
    edge_index,
    weight,
    bias=None,
    edge_attr=None,
    *,
    compute_dtype=jnp.bfloat16,   # bf16 MXU inputs, f32 accumulation
    tm=512,                       # adjacency / output row tile
    tk=512,                       # contraction (neighbor) tile
    tn=None,                      # out_features tile; None -> collapse j when small
):
    """Pallas forward of GraphConvolution.

    x:          (N, in_features) float32
    edge_index: (2, E) int32
    weight:     (in_features, out_features) float32
    bias:       (out_features,) float32 or None
    edge_attr:  (E,) float32 or None (defaults to ones, as in the module)
    """
    n, in_f = x.shape
    out_f = weight.shape[1]
    e = edge_index.shape[1]

    if edge_attr is None:
        edge_attr = jnp.ones((e,), dtype=jnp.float32)

    # --- tile sizes -----------------------------------------------------------
    tm = max(256, min(tm, _round_up(n, 256)))
    tk = max(256, min(tk, _round_up(n, 256)))
    n_pad = _round_up(n, math.lcm(tm, tk))

    if tn is None:
        f_pad = _round_up(out_f, 128)
        if f_pad <= 1024:
            tn = f_pad            # collapse j axis: each adj tile DMA'd exactly once
        else:
            tn = 512
            f_pad = _round_up(out_f, tn)
    else:
        f_pad = _round_up(out_f, tn)

    nib = n_pad // tm             # output row blocks
    njb = f_pad // tn             # output feature blocks
    nkb = n_pad // tk             # adjacency column blocks (contraction)

    # --- operands, padded & scattered directly in compute_dtype ----------------
    # Duplicate edges sum (matches torch.spmm on an uncoalesced COO tensor).
    adj_c = jnp.zeros((n_pad, n_pad), compute_dtype).at[
        edge_index[0], edge_index[1]
    ].add(edge_attr.astype(compute_dtype))
    x_c = jnp.zeros((n_pad, in_f), compute_dtype).at[:n, :].set(
        x.astype(compute_dtype))
    w_c = jnp.zeros((in_f, f_pad), compute_dtype).at[:, :out_f].set(
        weight.astype(compute_dtype))
    if bias is None:
        b_p = jnp.zeros((1, f_pad), jnp.float32)
    else:
        b_p = jnp.zeros((1, f_pad), jnp.float32).at[0, :out_f].set(
            bias.astype(jnp.float32))

    # --- tile-level CSR of the adjacency (block-sparse k loop) -----------------
    rb = edge_index[0] // tm
    cb = edge_index[1] // tk
    nz = jnp.zeros((nib, nkb), jnp.bool_).at[rb, cb].set(True)
    kcount = jnp.sum(nz, axis=1).astype(jnp.int32)           # nonzero tiles per row blk
    order = jnp.argsort(jnp.logical_not(nz).astype(jnp.int32), axis=1,
                        stable=True).astype(jnp.int32)       # nonzero tile ids first
    rows = jnp.arange(nib)
    last = jnp.where(kcount > 0, order[rows, jnp.maximum(kcount - 1, 0)], 0)
    tpos = jnp.arange(nkb)[None, :]
    # Tail entries repeat the last valid block so guarded-off steps re-use the
    # resident tile (no extra DMA).
    kidx = jnp.where(tpos < kcount[:, None], order, last[:, None]).astype(jnp.int32)
    kidx_flat = kidx.reshape(-1)

    try:   # concrete edge_index: bound the k axis by the densest row block
        max_kb = max(int(kcount.max()), 1) if e > 0 else 1
    except Exception:   # traced (e.g. under jit): fall back to the full k range
        max_kb = nkb

    # --- fused pallas_call ------------------------------------------------------
    ax_first = in_f < out_f   # route the O(N^2) contraction through min(in_f, out_f)
    kernel = _gcn_ax_first_kernel if ax_first else _gcn_xw_first_kernel
    scratch = [pltpu.VMEM((tm, in_f), jnp.float32)] if ax_first else []

    item_c = jnp.dtype(compute_dtype).itemsize
    steps = nib * njb * max_kb
    if ax_first:
        flops = 2 * steps * tm * tk * in_f + 2 * nib * njb * tm * in_f * tn
    else:
        flops = 2 * steps * (tk * in_f * tn + tm * tk * tn)
    bytes_accessed = (
        steps * (tm * tk + tk * in_f) * item_c          # adj + X tiles (incl. re-reads)
        + nib * njb * (in_f * tn * item_c + tn * 4)     # W + bias re-fetches
        + n_pad * f_pad * 4                             # f32 output writeback
    )

    def _adj_map(i, j, k, kidx_ref, kcnt_ref):
        return (i, kidx_ref[i * nkb + k])

    def _x_map(i, j, k, kidx_ref, kcnt_ref):
        return (kidx_ref[i * nkb + k], 0)

    out = pl.pallas_call(
        kernel,
        out_shape=jax.ShapeDtypeStruct((n_pad, f_pad), jnp.float32),
        grid_spec=pltpu.PrefetchScalarGridSpec(
            num_scalar_prefetch=2,
            grid=(nib, njb, max_kb),
            in_specs=[
                pl.BlockSpec((tm, tk), _adj_map),
                pl.BlockSpec((tk, in_f), _x_map),
                pl.BlockSpec((in_f, tn), lambda i, j, k, kidx, kcnt: (0, j)),
                pl.BlockSpec((1, tn), lambda i, j, k, kidx, kcnt: (0, j)),
            ],
            out_specs=pl.BlockSpec((tm, tn), lambda i, j, k, kidx, kcnt: (i, j)),
            scratch_shapes=scratch,
        ),
        compiler_params=pltpu.CompilerParams(
            dimension_semantics=("parallel", "parallel", "arbitrary"),
        ),
        cost_estimate=pl.CostEstimate(
            flops=int(flops), transcendentals=0,
            bytes_accessed=int(bytes_accessed)),
    )(kidx_flat, kcount, adj_c, x_c, w_c, b_p)

    # Slice padded rows/cols back off.
    return out[:n, :out_f]


def init_params(key, in_features, out_features, use_bias=True):
    """Deterministic parameter init matching reset_parameters()."""
    stdv = 1.0 / math.sqrt(out_features)
    weight = jax.random.uniform(
        key, (in_features, out_features), dtype=jnp.float32,
        minval=-stdv, maxval=stdv)
    bias = jnp.zeros((out_features,), dtype=jnp.float32) if use_bias else None
    return weight, bias


if __name__ == "__main__":
    key = jax.random.PRNGKey(0)

    def dense_adj(edge_index, n, e):
        return jnp.zeros((n, n), jnp.float32).at[
            edge_index[0], edge_index[1]].add(jnp.ones((e,), jnp.float32))

    # ---- case 1: out_f <= in_f  (fused A @ (X @ W) path) ------------------------
    k_x, k_e, k_w, k_b, key = jax.random.split(key, 5)
    N, IN_F, OUT_F, E = 16, 32, 32, 48
    x = jax.random.normal(k_x, (N, IN_F), dtype=jnp.float32)
    edge_index = jax.random.randint(k_e, (2, E), 0, N, dtype=jnp.int32)
    weight, _ = init_params(k_w, IN_F, OUT_F)
    # reset_parameters() zeroes the bias; use a nonzero one so the bias epilogue
    # is actually exercised.
    bias = 0.1 * jax.random.normal(k_b, (OUT_F,), dtype=jnp.float32)

    out = graph_convolution(x, edge_index, weight, bias)
    jax.block_until_ready(out)
    assert out.shape == (N, OUT_F)

    adj = dense_adj(edge_index, N, E)
    sup = jnp.dot(x.astype(jnp.bfloat16), weight.astype(jnp.bfloat16),
                  preferred_element_type=jnp.float32).astype(jnp.bfloat16)
    ref_bf16 = jnp.dot(adj.astype(jnp.bfloat16), sup,
                       preferred_element_type=jnp.float32) + bias
    ref_f32 = adj @ (x @ weight) + bias
    assert jnp.allclose(out, ref_bf16, atol=2e-3, rtol=2e-3)
    assert jnp.allclose(out, ref_f32, atol=1e-1, rtol=1e-1)

    # ---- case 2: in_f < out_f  ((A @ X) @ W path) -------------------------------
    k_x, k_e, k_w, k_b, key = jax.random.split(key, 5)
    N, IN_F, OUT_F, E = 24, 16, 64, 64
    x = jax.random.normal(k_x, (N, IN_F), dtype=jnp.float32)
    edge_index = jax.random.randint(k_e, (2, E), 0, N, dtype=jnp.int32)
    weight, _ = init_params(k_w, IN_F, OUT_F)
    bias = 0.1 * jax.random.normal(k_b, (OUT_F,), dtype=jnp.float32)

    out2 = graph_convolution(x, edge_index, weight, bias)
    jax.block_until_ready(out2)
    assert out2.shape == (N, OUT_F)

    adj = dense_adj(edge_index, N, E)
    ax = jnp.dot(adj.astype(jnp.bfloat16), x.astype(jnp.bfloat16),
                 preferred_element_type=jnp.float32).astype(jnp.bfloat16)
    ref_bf16 = jnp.dot(ax, weight.astype(jnp.bfloat16),
                       preferred_element_type=jnp.float32) + bias
    ref_f32 = adj @ (x @ weight) + bias
    assert jnp.allclose(out2, ref_bf16, atol=2e-3, rtol=2e-3)
    assert jnp.allclose(out2, ref_f32, atol=1e-1, rtol=1e-1)

    print("KERNEL_OK")
</pallas_src>

<mosaic_0001>
module attributes {stable_mosaic.version = 11 : i64} {
  func.func @_gcn_xw_first_kernel(%arg0: i32, %arg1: i32, %arg2: i32, %arg3: memref<1xi32, #tpu.memory_space<smem>>, %arg4: memref<1xi32, #tpu.memory_space<smem>>, %arg5: memref<256x256xbf16, #tpu.memory_space<vmem>>, %arg6: memref<256x32xbf16, #tpu.memory_space<vmem>>, %arg7: memref<32x128xbf16, #tpu.memory_space<vmem>>, %arg8: memref<1x128xf32, #tpu.memory_space<vmem>>, %arg9: memref<256x128xf32, #tpu.memory_space<vmem>>) attributes {dimension_semantics = [#tpu.dimension_semantics<parallel>, #tpu.dimension_semantics<parallel>, #tpu.dimension_semantics<arbitrary>], iteration_bounds = array<i64: 1, 1, 1>, scalar_prefetch = 2 : i64, scratch_operands = 0 : i64, tpu.core_type = #tpu.core_type<tc>, window_params = [{transform_indices = @transform_0, window_bounds = array<i64: 256, 256>}, {transform_indices = @transform_1, window_bounds = array<i64: 256, 32>}, {transform_indices = @transform_2, window_bounds = array<i64: 32, 128>}, {transform_indices = @transform_3, window_bounds = array<i64: 1, 128>}, {transform_indices = @transform_4, window_bounds = array<i64: 256, 128>}]} {
    %c0_i32 = arith.constant 0 : i32
    %0 = arith.cmpi eq, %arg2, %c0_i32 : i32
    %1 = arith.extui %0 : i1 to i32
    %c0_i32_0 = arith.constant 0 : i32
    %2 = arith.cmpi ne, %1, %c0_i32_0 : i32
    scf.if %2 {
      %c0 = arith.constant 0 : index
      %c0_2 = arith.constant 0 : index
      %8 = vector.load %arg8[%c0, %c0_2] : memref<1x128xf32, #tpu.memory_space<vmem>>, vector<1x128xf32>
      %9 = vector.shape_cast %8 : vector<1x128xf32> to vector<1x128xf32>
      %10 = vector.broadcast %9 : vector<1x128xf32> to vector<256x128xf32>
      %c0_3 = arith.constant 0 : index
      %c0_4 = arith.constant 0 : index
      %11 = vector.load %arg9[%c0_3, %c0_4] : memref<256x128xf32, #tpu.memory_space<vmem>>, vector<256x128xf32>
      tpu.vector_store %arg9[%c0_3, %c0_4], %10 {strides = array<i32>} : memref<256x128xf32, #tpu.memory_space<vmem>>, vector<256x128xf32>,
    } else {
    }
    %3 = arith.index_cast %arg0 : i32 to index
    %4 = memref.load %arg4[%3] : memref<1xi32, #tpu.memory_space<smem>>
    %5 = arith.cmpi slt, %arg2, %4 : i32
    %6 = arith.extui %5 : i1 to i32
    %c0_i32_1 = arith.constant 0 : i32
    %7 = arith.cmpi ne, %6, %c0_i32_1 : i32
    scf.if %7 {
      %c0 = arith.constant 0 : index
      %c0_2 = arith.constant 0 : index
      %8 = vector.load %arg6[%c0, %c0_2] : memref<256x32xbf16, #tpu.memory_space<vmem>>, vector<256x32xbf16>
      %c0_3 = arith.constant 0 : index
      %c0_4 = arith.constant 0 : index
      %9 = vector.load %arg7[%c0_3, %c0_4] : memref<32x128xbf16, #tpu.memory_space<vmem>>, vector<32x128xbf16>
      %cst = arith.constant dense<0.000000e+00> : vector<256x128xf32>
      %10 = tpu.matmul %8, %9, %cst {dimension_numbers = #tpu.dot_dimension_numbers<[1], [0], [0], [1], [0, 0, 1, 1], [], []>} : vector<256x32xbf16>, vector<32x128xbf16>, vector<256x128xf32> -> vector<256x128xf32>
      %11 = arith.truncf %10 : vector<256x128xf32> to vector<256x128xbf16>
      %c0_5 = arith.constant 0 : index
      %c0_6 = arith.constant 0 : index
      %12 = vector.load %arg9[%c0_5, %c0_6] : memref<256x128xf32, #tpu.memory_space<vmem>>, vector<256x128xf32>
      %c0_7 = arith.constant 0 : index
      %c0_8 = arith.constant 0 : index
      %13 = vector.load %arg5[%c0_7, %c0_8] : memref<256x256xbf16, #tpu.memory_space<vmem>>, vector<256x256xbf16>
      %cst_9 = arith.constant dense<0.000000e+00> : vector<256x128xf32>
      %14 = tpu.matmul %13, %11, %cst_9 {dimension_numbers = #tpu.dot_dimension_numbers<[1], [0], [0], [1], [0, 0, 1, 1], [], []>} : vector<256x256xbf16>, vector<256x128xbf16>, vector<256x128xf32> -> vector<256x128xf32>
      %15 = arith.addf %12, %14 : vector<256x128xf32>
      %c0_10 = arith.constant 0 : index
      %c0_11 = arith.constant 0 : index
      %16 = vector.load %arg9[%c0_10, %c0_11] : memref<256x128xf32, #tpu.memory_space<vmem>>, vector<256x128xf32>
      tpu.vector_store %arg9[%c0_10, %c0_11], %15 {strides = array<i32>} : memref<256x128xf32, #tpu.memory_space<vmem>>, vector<256x128xf32>,
    } else {
    }
    return
  }
  func.func @transform_0(%arg0: i32, %arg1: i32, %arg2: i32, %arg3: memref<1xi32, #tpu.memory_space<smem>>, %arg4: memref<1xi32, #tpu.memory_space<smem>>) -> (i32, i32) {
    %c1_i32 = arith.constant 1 : i32
    %0 = arith.muli %arg0, %c1_i32 : i32
    %1 = arith.addi %0, %arg2 : i32
    %2 = arith.index_cast %1 : i32 to index
    %3 = memref.load %arg3[%2] : memref<1xi32, #tpu.memory_space<smem>>
    %c0_i32 = arith.constant 0 : i32
    return %arg0, %3 : i32, i32
  }
  func.func @transform_1(%arg0: i32, %arg1: i32, %arg2: i32, %arg3: memref<1xi32, #tpu.memory_space<smem>>, %arg4: memref<1xi32, #tpu.memory_space<smem>>) -> (i32, i32) {
    %c1_i32 = arith.constant 1 : i32
    %0 = arith.muli %arg0, %c1_i32 : i32
    %1 = arith.addi %0, %arg2 : i32
    %2 = arith.index_cast %1 : i32 to index
    %3 = memref.load %arg3[%2] : memref<1xi32, #tpu.memory_space<smem>>
    %c0_i32 = arith.constant 0 : i32
    %c0_i32_0 = arith.constant 0 : i32
    return %3, %c0_i32 : i32, i32
  }
  func.func @transform_2(%arg0: i32, %arg1: i32, %arg2: i32, %arg3: memref<1xi32, #tpu.memory_space<smem>>, %arg4: memref<1xi32, #tpu.memory_space<smem>>) -> (i32, i32) {
    %c0_i32 = arith.constant 0 : i32
    %c0_i32_0 = arith.constant 0 : i32
    return %c0_i32, %arg1 : i32, i32
  }
  func.func @transform_3(%arg0: i32, %arg1: i32, %arg2: i32, %arg3: memref<1xi32, #tpu.memory_space<smem>>, %arg4: memref<1xi32, #tpu.memory_space<smem>>) -> (i32, i32) {
    %c0_i32 = arith.constant 0 : i32
    %c0_i32_0 = arith.constant 0 : i32
    return %c0_i32, %arg1 : i32, i32
  }
  func.func @transform_4(%arg0: i32, %arg1: i32, %arg2: i32, %arg3: memref<1xi32, #tpu.memory_space<smem>>, %arg4: memref<1xi32, #tpu.memory_space<smem>>) -> (i32, i32) {
    %c0_i32 = arith.constant 0 : i32
    return %arg0, %arg1 : i32, i32
  }
}

</mosaic_0001>

<bundles_post_ra>
// kernel: tpu_custom_call.1
= control target key start
LH: loop header
LB: loop body
LE: loop exit
PB: predicated region body
PF: predicated region fallthrough
CT: control target
= control target key end

     0   :  { %13 = vsyncpa [#allocation6], 0  ;;  %s1445_s0 = inlined_call_operand.<no memory space> [shape: s32[1], index: 0, kind: input, shape index: {}]   ;;  %s1446_s1 = inlined_call_operand.<no memory space> [shape: s32[1], index: 1, kind: input, shape index: {}]   ;;  %s1447_s2 = inlined_call_operand.hbm [shape: bf16[256,256], index: 2, kind: input, shape index: {}]   ;;  %s1448_s3 = inlined_call_operand.vmem [shape: bf16[256,32], index: 3, kind: input, shape index: {}]   ;;  %s1449_s4 = inlined_call_operand.vmem [shape: bf16[32,128], index: 4, kind: input, shape index: {}]   ;;  %s1450_s5 = inlined_call_operand.vmem [shape: f32[1,128], index: 5, kind: input, shape index: {}]   ;;  %s1451_s6 = inlined_call_operand.hbm [shape: f32[256,128], index: 6, kind: output, shape index: {}]  }
   0x1   :  { %14 = vsyncpa [#allocation7], 0  ;;  %s1021_s23 = sshll.u32 %s1445_s0, 7  ;;  %s1324_s27 = smov [#allocation5]  }
   0x2   :  { %s24_s26 = scalar_lea.hbm %s1447_s2, %s1021_s23  ;;  %s25_s28 = sshll.u32 %s1324_s27, 4  ;;  %s26_s28 = int_to_ptr.vmem [resolvable:$true] %s25_s28 }
   0x3   :  { %s1274_s29 = scalar_lea.hbm %s24_s26, 4096  ;;  %s1276_s8 = scalar_lea.hbm %s1447_s2, 4096 }
   0x4   :  { %p1275_p0 = scmp.ne.s32.totalorder %s24_s26, %s1274_s29  ;;  %p1277_p1 = scmp.lt.u32.totalorder %s24_s26, %s1447_s2 }
   0x5   :  { %p1278_p2 = scmp.lt.u32.totalorder %s1276_s8, %s1274_s29  ;;  %p1280_p4 = scmp.lt.u32.totalorder %s1274_s29, %s24_s26 }
   0x7   :  { %p1279_p3 = por %p1278_p2, %p1277_p1 }
   0x9   :  { %p1281_p5 = por %p1280_p4, %p1279_p3 }
   0xb   :  { %p1282_p6 = pnand %p1281_p5, %p1275_p0 }
   0xd   :  { %1285 = shalt.err (!%p1282_p6)
}
   0xe   :  { %s1286_s11 = scalar_lea.vmem %s26_s28, 4096  ;;  %p1291_p8 = scmp.lt.s32.totalorder %s26_s28, %s26_s28 }
   0xf   :  { %p1287_p7 = scmp.ne.s32.totalorder %s26_s28, %s1286_s11  ;;  %p1292_p9 = scmp.lt.s32.totalorder %s1286_s11, %s1286_s11 }
  0x11   :  { %p1293_p10 = por %p1292_p9, %p1291_p8 }
  0x13   :  { %p1294_p11 = pnand %p1293_p10, %p1287_p7 }
  0x15   :  { %1297 = shalt.err (!%p1294_p11)
}
  0x16   :  { %s1325_s12 = smov 128   ;;  %s1326_s13 = smov 8  }
  0x17   :  { %31 = dma.hbm_to_vmem [thread:$0]  %s24_s26, 4096, %s26_s28, [#allocation6], %s1325_s12, %s1325_s12, %s1326_s13  }
  0x18   :  { %1320 = dma.done.wait [#allocation6], 4096  }
  0x19   :  { %1321 = vsyncadd [#allocation6], 4294963200  ;;  %s950_s15 = sshll.u32 %s1445_s0, 5  ;;  %v952_v0 = vld [vmem:[%s1450_s5] ss:$0 sm:$0xff]  ;;  %p954_p13 = scmp.le.s32.totalorder %s1446_s1, 0 }
  0x1a   :  { %p64_p12 = scmp.lt.s32.totalorder %s950_s15, 31  ;;  %83 = vst [vmem:[#allocation8] sm:$0xff] %v952_v0  ;;  %84 = vst [vmem:[#allocation8 + $0x8] sm:$0xff] %v952_v0  ;;  %v1208_v1 = vld [vmem:[%s1449_s4] sm:$0xff] (!%p954_p13)   ;;  %v1209_v2 = vld [vmem:[%s1449_s4 + $0x8] sm:$0xff] (!%p954_p13)   ;;  %vm248_vm0 = vcmask (!%p954_p13), 261120  }
  0x1b   :  { %85 = vst [vmem:[#allocation8 + $0x10] sm:$0xff] %v952_v0  ;;  %86 = vst [vmem:[#allocation8 + $0x18] sm:$0xff] %v952_v0  ;;  %1152 = vmatprep.subr.bf16.mxu0 (!%p954_p13), %v1208_v1  ;;  %v1228_v19 = vld [vmem:[#allocation5 + $0x54] ss:$8 sps:$4 sm:$0xff] (!%p954_p13)   ;;  %v1246_v20 = vld [vmem:[#allocation5 + $0x4] ss:$8 sps:$4 sm:$0xff] (!%p954_p13)  }
  0x1c   :  { %s1453_s15 = smov (!%p64_p12, %s950_s15), 31  ;;  %87 = vst [vmem:[#allocation8 + $0x20] sm:$0xff] %v952_v0  ;;  %88 = vst [vmem:[#allocation8 + $0x28] sm:$0xff] %v952_v0  ;;  %1153 = vmatpush3.bf16.msra.mxu0 (!%p954_p13), %v1208_v1  ;;  %770 = vmatprep.mubr.bf16.mxu1 (!%p954_p13), %v1228_v19  ;;  %v1238_v19 = vld [vmem:[#allocation5 + $0x94] ss:$8 sps:$4 sm:$0xff] (!%p954_p13)  }
  0x1d   :  { %s951_s16 = sshll.u32 %s1453_s15, 2  ;;  %89 = vst [vmem:[#allocation8 + $0x30] sm:$0xff] %v952_v0  ;;  %90 = vst [vmem:[#allocation8 + $0x38] sm:$0xff] %v952_v0  ;;  %1154 = vmatprep.subr.bf16.mxu0 (!%p954_p13), %v1209_v2 }
  0x1e   :  { %s1384_s19 = scalar_lea.vmem %s1448_s3, %s951_s16  ;;  %91 = vst [vmem:[#allocation8 + $0x40] sm:$0xff] %v952_v0  ;;  %92 = vst [vmem:[#allocation8 + $0x48] sm:$0xff] %v952_v0 }
  0x1f   :  { %93 = vst [vmem:[#allocation8 + $0x50] sm:$0xff] %v952_v0  ;;  %94 = vst [vmem:[#allocation8 + $0x58] sm:$0xff] %v952_v0  ;;  %v1210_v3 = vld [vmem:[%s1384_s19] sm:$0xff] (!%p954_p13)   ;;  %v1211_v4 = vld [vmem:[%s1384_s19 + $0x8] sm:$0xff] (!%p954_p13)  }
  0x20   :  { %95 = vst [vmem:[#allocation8 + $0x60] sm:$0xff] %v952_v0  ;;  %96 = vst [vmem:[#allocation8 + $0x68] sm:$0xff] %v952_v0  ;;  %1156 = vmatprep.mubr.msk.bf16.mxu0 (!%p954_p13), %vm248_vm0, %v1210_v3  ;;  %1155 = vmatpush3.bf16.msra.mxu0 (!%p954_p13), %v1209_v2  ;;  %v1212_v5 = vld [vmem:[%s1384_s19 + $0x10] sm:$0xff] (!%p954_p13)   ;;  %v1213_v6 = vld [vmem:[%s1384_s19 + $0x18] sm:$0xff] (!%p954_p13)  }
  0x21   :  { %97 = vst [vmem:[#allocation8 + $0x70] sm:$0xff] %v952_v0  ;;  %98 = vst [vmem:[#allocation8 + $0x78] sm:$0xff] %v952_v0  ;;  %v1214_v7 = vld [vmem:[%s1384_s19 + $0x20] sm:$0xff] (!%p954_p13)   ;;  %v1215_v8 = vld [vmem:[%s1384_s19 + $0x28] sm:$0xff] (!%p954_p13)  }
  0x22   :  { %99 = vst [vmem:[#allocation8 + $0x80] sm:$0xff] %v952_v0  ;;  %100 = vst [vmem:[#allocation8 + $0x88] sm:$0xff] %v952_v0  ;;  %v1216_v9 = vld [vmem:[%s1384_s19 + $0x30] sm:$0xff] (!%p954_p13)   ;;  %v1217_v10 = vld [vmem:[%s1384_s19 + $0x38] sm:$0xff] (!%p954_p13)  }
  0x23   :  { %101 = vst [vmem:[#allocation8 + $0x90] sm:$0xff] %v952_v0  ;;  %102 = vst [vmem:[#allocation8 + $0x98] sm:$0xff] %v952_v0  ;;  %119 = sbr.rel (%p954_p13) target bundleno = 616 (0x268), region = 29  ;;  %1157 = vmatmul.mubr.msk.bf16.vlgmr.msra.gmra.mrb[0].mxu0 (!%p954_p13), %vm248_vm0, %v1211_v4  ;;  %v1218_v11 = vld [vmem:[%s1384_s19 + $0x40] sm:$0xff] (!%p954_p13)   ;;  %v1219_v12 = vld [vmem:[%s1384_s19 + $0x48] sm:$0xff] (!%p954_p13)  }
  0x24   :  { %103 = vst [vmem:[#allocation8 + $0xa0] sm:$0xff] %v952_v0  ;;  %104 = vst [vmem:[#allocation8 + $0xa8] sm:$0xff] %v952_v0  ;;  %1160 = vmatprep.mubr.msk.bf16.mxu0 (!%p954_p13), %vm248_vm0, %v1212_v5  ;;  %v1220_v13 = vld [vmem:[%s1384_s19 + $0x50] sm:$0xff] (!%p954_p13)   ;;  %v1221_v14 = vld [vmem:[%s1384_s19 + $0x58] sm:$0xff] (!%p954_p13)  }
  0x25   :  { %105 = vst [vmem:[#allocation8 + $0xb0] sm:$0xff] %v952_v0  ;;  %106 = vst [vmem:[#allocation8 + $0xb8] sm:$0xff] %v952_v0  ;;  %v1222_v15 = vld [vmem:[%s1384_s19 + $0x60] sm:$0xff] (!%p954_p13)   ;;  %v1223_v16 = vld [vmem:[%s1384_s19 + $0x68] sm:$0xff] (!%p954_p13)  }
  0x26   :  { %107 = vst [vmem:[#allocation8 + $0xc0] sm:$0xff] %v952_v0  ;;  %108 = vst [vmem:[#allocation8 + $0xc8] sm:$0xff] %v952_v0  ;;  %v1224_v17 = vld [vmem:[%s1384_s19 + $0x70] sm:$0xff] (!%p954_p13)   ;;  %v1225_v18 = vld [vmem:[%s1384_s19 + $0x78] sm:$0xff] (!%p954_p13)  }
  0x27   :  { %109 = vst [vmem:[#allocation8 + $0xd0] sm:$0xff] %v952_v0  ;;  %110 = vst [vmem:[#allocation8 + $0xd8] sm:$0xff] %v952_v0  ;;  %v1226_v5 = vld [vmem:[#allocation5 + $0x50] ss:$8 sps:$4 sm:$0xff] (!%p954_p13)  }
  0x28   :  { %111 = vst [vmem:[#allocation8 + $0xe0] sm:$0xff] %v952_v0  ;;  %112 = vst [vmem:[#allocation8 + $0xe8] sm:$0xff] %v952_v0 }
  0x29   :  { %113 = vst [vmem:[#allocation8 + $0xf0] sm:$0xff] %v952_v0  ;;  %114 = vst [vmem:[#allocation8 + $0xf8] sm:$0xff] %v952_v0 }
  0x2b   :  { %1161 = vmatmul.mubr.msk.bf16.gmra.mrb[4].mxu0 %vm248_vm0, %v1213_v6  ;;  %v1244_v6 = vld [vmem:[#allocation5] ss:$8 sps:$4 sm:$0xff]  }
  0x2c   :  { %1164 = vmatprep.mubr.msk.bf16.mxu0 %vm248_vm0, %v1214_v7  ;;  %v1229_v7 = vld [vmem:[#allocation5 + $0x64] ss:$8 sps:$4 sm:$0xff]  }
  0x33   :  { %1165 = vmatmul.mubr.msk.bf16.gmra.mrb[8].mxu0 %vm248_vm0, %v1215_v8  ;;  %v1250_v8 = vld [vmem:[#allocation5 + $0x14] ss:$8 sps:$4 sm:$0xff]  }
  0x34   :  { %1168 = vmatprep.mubr.msk.bf16.mxu0 %vm248_vm0, %v1216_v9  ;;  %v1231_v9 = vld [vmem:[#allocation5 + $0x60] ss:$8 sps:$4 sm:$0xff]  }
  0x3b   :  { %1169 = vmatmul.mubr.msk.bf16.gmra.mrb[12].mxu0 %vm248_vm0, %v1217_v10  ;;  %v1252_v10 = vld [vmem:[#allocation5 + $0x10] ss:$8 sps:$4 sm:$0xff]  }
  0x3c   :  { %1172 = vmatprep.mubr.msk.bf16.mxu0 %vm248_vm0, %v1218_v11  ;;  %v1232_v11 = vld [vmem:[#allocation5 + $0x74] ss:$8 sps:$4 sm:$0xff]  }
  0x43   :  { %1173 = vmatmul.mubr.msk.bf16.gmra.mrb[16].mxu0 %vm248_vm0, %v1219_v12  ;;  %v1256_v12 = vld [vmem:[#allocation5 + $0x24] ss:$8 sps:$4 sm:$0xff]  }
  0x44   :  { %1176 = vmatprep.mubr.msk.bf16.mxu0 %vm248_vm0, %v1220_v13  ;;  %v1234_v13 = vld [vmem:[#allocation5 + $0x70] ss:$8 sps:$4 sm:$0xff]  }
  0x4b   :  { %1177 = vmatmul.mubr.msk.bf16.gmra.mrb[20].mxu0 %vm248_vm0, %v1221_v14  ;;  %v1258_v14 = vld [vmem:[#allocation5 + $0x20] ss:$8 sps:$4 sm:$0xff]  }
  0x4c   :  { %1180 = vmatprep.mubr.msk.bf16.mxu0 %vm248_vm0, %v1222_v15  ;;  %v1235_v15 = vld [vmem:[#allocation5 + $0x84] ss:$8 sps:$4 sm:$0xff]  }
  0x53   :  { %1181 = vmatmul.mubr.msk.bf16.gmra.mrb[24].mxu0 %vm248_vm0, %v1223_v16  ;;  %v1262_v16 = vld [vmem:[#allocation5 + $0x34] ss:$8 sps:$4 sm:$0xff]  }
  0x54   :  { %1184 = vmatprep.mubr.msk.bf16.mxu0 %vm248_vm0, %v1224_v17  ;;  %v1237_v17 = vld [vmem:[#allocation5 + $0x80] ss:$8 sps:$4 sm:$0xff]  }
  0x5b   :  { %1185 = vmatmul.mubr.msk.bf16.gmra.mrb[28].mxu0 %vm248_vm0, %v1225_v18  ;;  %v1264_v18 = vld [vmem:[#allocation5 + $0x30] ss:$8 sps:$4 sm:$0xff]  }
  0x5c   :  { %730 = vmatprep.mubr.bf16.mxu0 %v1246_v20  ;;  %v1268_v20 = vld [vmem:[#allocation5 + $0x44] ss:$8 sps:$4 sm:$0xff]  }
  0xf6   :  { %v1158_v21 = vpop.f32.mrb[0].mxu0 }
  0xf7   :  { %v331_v22 = vpop.f32.mrb[1].mxu0 }
  0xf8   :  { %v1159_v23 = vpop.f32.mrb[2].mxu0 }
  0xf9   :  { %v459_v24 = vpack.c.bf16 %v1159_v23, %v1158_v21  ;;  %v334_v25 = vpop.f32.mrb[3].mxu0  ;;  %v1240_v21 = vld [vmem:[#allocation5 + $0x90] ss:$8 sps:$4 sm:$0xff]   ;;  %v1241_v23 = vld [vmem:[#allocation5 + $0xa4] ss:$8 sps:$4 sm:$0xff]  }
  0xfa   :  { %v458_v26 = vpack.c.bf16 %v334_v25, %v331_v22  ;;  %v1270_v22 = vld [vmem:[#allocation5 + $0x40] ss:$8 sps:$4 sm:$0xff]   ;;  %v1247_v25 = vld [vmem:[#allocation5 + $0xb4] ss:$8 sps:$4 sm:$0xff]  }
  0xfe   :  { %v1162_v27 = vpop.f32.mrb[4].mxu0 }
  0xff   :  { %v347_v28 = vpop.f32.mrb[5].mxu0 }
 0x100   :  { %v1163_v29 = vpop.f32.mrb[6].mxu0 }
 0x101   :  { %v461_v30 = vpack.c.bf16 %v1163_v29, %v1162_v27  ;;  %v350_v31 = vpop.f32.mrb[7].mxu0  ;;  %v1253_v27 = vld [vmem:[#allocation5 + $0xc4] ss:$8 sps:$4 sm:$0xff]   ;;  %v1259_v29 = vld [vmem:[#allocation5 + $0xd4] ss:$8 sps:$4 sm:$0xff]  }
 0x102   :  { %v460_v32 = vpack.c.bf16 %v350_v31, %v347_v28  ;;  %v1255_v28 = vld [vmem:[#allocation5 + $0xc0] ss:$8 sps:$4 sm:$0xff]   ;;  %v1265_v31 = vld [vmem:[#allocation5 + $0xe4] ss:$8 sps:$4 sm:$0xff]  }
 0x106   :  { %v1166_v33 = vpop.f32.mrb[8].mxu0 }
 0x107   :  { %v363_v34 = vpop.f32.mrb[9].mxu0 }
 0x108   :  { %v1167_v35 = vpop.f32.mrb[10].mxu0 }
 0x109   :  { %v463_v36 = vpack.c.bf16 %v1167_v35, %v1166_v33  ;;  %v366_v37 = vpop.f32.mrb[11].mxu0  ;;  %v1271_v33 = vld [vmem:[#allocation5 + $0xf4] ss:$8 sps:$4 sm:$0xff]  }
 0x10a   :  { %v462_v38 = vpack.c.bf16 %v366_v37, %v363_v34  ;;  %v1273_v34 = vld [vmem:[#allocation5 + $0xf0] ss:$8 sps:$4 sm:$0xff]  }
 0x10b   :  { %v484_v37 = vld [vmem:[#allocation8 + $0x50] sm:$0xff] }
 0x10e   :  { %v1170_v39 = vpop.f32.mrb[12].mxu0 }
 0x10f   :  { %v379_v40 = vpop.f32.mrb[13].mxu0 }
 0x110   :  { %v1171_v41 = vpop.f32.mrb[14].mxu0 }
 0x111   :  { %v465_v42 = vpack.c.bf16 %v1171_v41, %v1170_v39  ;;  %v382_v43 = vpop.f32.mrb[15].mxu0  ;;  %v474_v39 = vld [vmem:[#allocation8] sm:$0xff] }
 0x112   :  { %v464_v44 = vpack.c.bf16 %v382_v43, %v379_v40 }
 0x116   :  { %v1174_v45 = vpop.f32.mrb[16].mxu0 }
 0x117   :  { %v395_v46 = vpop.f32.mrb[17].mxu0 }
 0x118   :  { %v1175_v47 = vpop.f32.mrb[18].mxu0 }
 0x119   :  { %v467_v48 = vpack.c.bf16 %v1175_v47, %v1174_v45  ;;  %v398_v49 = vpop.f32.mrb[19].mxu0  ;;  %v485_v45 = vld [vmem:[#allocation8 + $0x58] sm:$0xff]  ;;  %v475_v47 = vld [vmem:[#allocation8 + $0x8] sm:$0xff] }
 0x11a   :  { %v466_v50 = vpack.c.bf16 %v398_v49, %v395_v46 }
 0x11c   :  { %1040 = vmatprep.subr.bf16.mxu0 %v466_v50  ;;  %1188 = vmatprep.subr.bf16.mxu1 %v466_v50 }
 0x11d   :  { %1041 = vmatpush3.bf16.msra.mxu0 %v458_v26  ;;  %1196 = vmatpush3.bf16.msra.mxu1 %v458_v26  ;;  %v1249_v26 = vld [vmem:[#allocation5 + $0xb0] ss:$8 sps:$4 sm:$0xff]  }
 0x11e   :  { %v1178_v51 = vpop.f32.mrb[20].mxu0  ;;  %1042 = vmatprep.subr.bf16.mxu0 %v467_v48  ;;  %1189 = vmatprep.subr.bf16.mxu1 %v467_v48 }
 0x11f   :  { %v411_v52 = vpop.f32.mrb[21].mxu0 }
 0x120   :  { %v1179_v53 = vpop.f32.mrb[22].mxu0 }
 0x121   :  { %v469_v54 = vpack.c.bf16 %v1179_v53, %v1178_v51  ;;  %v414_v55 = vpop.f32.mrb[23].mxu0  ;;  %1043 = vmatpush3.bf16.msra.mxu0 %v459_v24  ;;  %1197 = vmatpush3.bf16.msra.mxu1 %v459_v24  ;;  %v1243_v24 = vld [vmem:[#allocation5 + $0xa0] ss:$8 sps:$4 sm:$0xff]  }
 0x122   :  { %v468_v56 = vpack.c.bf16 %v414_v55, %v411_v52 }
 0x124   :  { %1044 = vmatprep.subr.bf16.mxu0 %v468_v56  ;;  %1190 = vmatprep.subr.bf16.mxu1 %v468_v56 }
 0x125   :  { %1045 = vmatpush3.bf16.msra.mxu0 %v460_v32  ;;  %1198 = vmatpush3.bf16.msra.mxu1 %v460_v32  ;;  %v1267_v32 = vld [vmem:[#allocation5 + $0xe0] ss:$8 sps:$4 sm:$0xff]  }
 0x126   :  { %v1182_v57 = vpop.f32.mrb[24].mxu0  ;;  %1046 = vmatprep.subr.bf16.mxu0 %v469_v54  ;;  %1191 = vmatprep.subr.bf16.mxu1 %v469_v54 }
 0x127   :  { %v427_v58 = vpop.f32.mrb[25].mxu0 }
 0x128   :  { %v1183_v59 = vpop.f32.mrb[26].mxu0 }
 0x129   :  { %v471_v60 = vpack.c.bf16 %v1183_v59, %v1182_v57  ;;  %v430_v61 = vpop.f32.mrb[27].mxu0  ;;  %1047 = vmatpush3.bf16.msra.mxu0 %v461_v30  ;;  %1199 = vmatpush3.bf16.msra.mxu1 %v461_v30  ;;  %v1261_v30 = vld [vmem:[#allocation5 + $0xd0] ss:$8 sps:$4 sm:$0xff]   ;;  %v486_v57 = vld [vmem:[#allocation8 + $0x60] sm:$0xff] }
 0x12a   :  { %v470_v62 = vpack.c.bf16 %v430_v61, %v427_v58  ;;  %v476_v59 = vld [vmem:[#allocation8 + $0x10] sm:$0xff] }
 0x12c   :  { %1048 = vmatprep.subr.bf16.mxu0 %v470_v62  ;;  %1192 = vmatprep.subr.bf16.mxu1 %v470_v62 }
 0x12d   :  { %1049 = vmatpush3.bf16.msra.mxu0 %v462_v38  ;;  %1200 = vmatpush3.bf16.msra.mxu1 %v462_v38 }
 0x12e   :  { %v1186_v63 = vpop.f32.mrb[28].mxu0  ;;  %1050 = vmatprep.subr.bf16.mxu0 %v471_v60  ;;  %1193 = vmatprep.subr.bf16.mxu1 %v471_v60 }
 0x12f   :  { %v443_v0 = vpop.f32.mrb[29].mxu0 }
 0x130   :  { %v1187_v1 = vpop.f32.mrb[30].mxu0 }
 0x131   :  { %v473_v2 = vpack.c.bf16 %v1187_v1, %v1186_v63  ;;  %v446_v3 = vpop.f32.mrb[31].mxu0  ;;  %1051 = vmatpush3.bf16.msra.mxu0 %v463_v36  ;;  %1201 = vmatpush3.bf16.msra.mxu1 %v463_v36  ;;  %v487_v1 = vld [vmem:[#allocation8 + $0x68] sm:$0xff] }
 0x132   :  { %v472_v4 = vpack.c.bf16 %v446_v3, %v443_v0  ;;  %v477_v3 = vld [vmem:[#allocation8 + $0x18] sm:$0xff] }
 0x134   :  { %1052 = vmatprep.subr.bf16.mxu0 %v472_v4  ;;  %1194 = vmatprep.subr.bf16.mxu1 %v472_v4 }
 0x135   :  { %1053 = vmatpush3.bf16.msra.mxu0 %v464_v44  ;;  %1202 = vmatpush3.bf16.msra.mxu1 %v464_v44 }
 0x136   :  { %1054 = vmatprep.subr.bf16.mxu0 %v473_v2  ;;  %1195 = vmatprep.subr.bf16.mxu1 %v473_v2 }
 0x139   :  { %1055 = vmatpush3.bf16.msra.mxu0 %v465_v42  ;;  %1203 = vmatpush3.bf16.msra.mxu1 %v465_v42 }
 0x13c   :  { %771 = vmatmul.mubr.bf16.vlgmr.msra.gmra.mrb[0].mxu1 %v1226_v5  ;;  %731 = vmatmul.mubr.bf16.vlgmr.msra.gmra.mrb[32].mxu0 %v1244_v6 }
 0x13d   :  { %778 = vmatprep.mubr.bf16.mxu1 %v1229_v7  ;;  %738 = vmatprep.mubr.bf16.mxu0 %v1250_v8 }
 0x144   :  { %779 = vmatmul.mubr.bf16.gmra.mrb[4].mxu1 %v1231_v9  ;;  %739 = vmatmul.mubr.bf16.gmra.mrb[36].mxu0 %v1252_v10 }
 0x145   :  { %786 = vmatprep.mubr.bf16.mxu1 %v1232_v11  ;;  %746 = vmatprep.mubr.bf16.mxu0 %v1256_v12 }
 0x14c   :  { %787 = vmatmul.mubr.bf16.gmra.mrb[8].mxu1 %v1234_v13  ;;  %747 = vmatmul.mubr.bf16.gmra.mrb[40].mxu0 %v1258_v14  ;;  %v488_v13 = vld [vmem:[#allocation8 + $0x70] sm:$0xff] }
 0x14d   :  { %794 = vmatprep.mubr.bf16.mxu1 %v1235_v15  ;;  %754 = vmatprep.mubr.bf16.mxu0 %v1262_v16  ;;  %v478_v15 = vld [vmem:[#allocation8 + $0x20] sm:$0xff] }
 0x154   :  { %795 = vmatmul.mubr.bf16.gmra.mrb[12].mxu1 %v1237_v17  ;;  %755 = vmatmul.mubr.bf16.gmra.mrb[44].mxu0 %v1264_v18 }
 0x155   :  { %802 = vmatprep.mubr.bf16.mxu1 %v1238_v19  ;;  %762 = vmatprep.mubr.bf16.mxu0 %v1268_v20 }
 0x15c   :  { %803 = vmatmul.mubr.bf16.gmra.mrb[16].mxu1 %v1240_v21  ;;  %763 = vmatmul.mubr.bf16.gmra.mrb[48].mxu0 %v1270_v22  ;;  %v489_v21 = vld [vmem:[#allocation8 + $0x78] sm:$0xff] }
 0x15d   :  { %810 = vmatprep.mubr.bf16.mxu1 %v1241_v23  ;;  %v479_v23 = vld [vmem:[#allocation8 + $0x28] sm:$0xff] }
 0x164   :  { %811 = vmatmul.mubr.bf16.gmra.mrb[20].mxu1 %v1243_v24 }
 0x165   :  { %818 = vmatprep.mubr.bf16.mxu1 %v1247_v25 }
 0x16c   :  { %819 = vmatmul.mubr.bf16.gmra.mrb[24].mxu1 %v1249_v26 }
 0x16d   :  { %826 = vmatprep.mubr.bf16.mxu1 %v1253_v27 }
 0x174   :  { %827 = vmatmul.mubr.bf16.gmra.mrb[28].mxu1 %v1255_v28 }
 0x175   :  { %834 = vmatprep.mubr.bf16.mxu1 %v1259_v29 }
 0x17c   :  { %835 = vmatmul.mubr.bf16.gmra.mrb[32].mxu1 %v1261_v30 }
 0x17d   :  { %842 = vmatprep.mubr.bf16.mxu1 %v1265_v31 }
 0x184   :  { %843 = vmatmul.mubr.bf16.gmra.mrb[36].mxu1 %v1267_v32 }
 0x185   :  { %850 = vmatprep.mubr.bf16.mxu1 %v1271_v33  ;;  %v490_v33 = vld [vmem:[#allocation8 + $0x80] sm:$0xff] }
 0x18c   :  { %851 = vmatmul.mubr.bf16.gmra.mrb[40].mxu1 %v1273_v34 }
 0x20f   :  { %v1086_v35 = vpop.f32.mrb[0].mxu1  ;;  %v1056_v36 = vpop.f32.mrb[32].mxu0 }
 0x210   :  { %v1087_v38 = vpop.f32.mrb[1].mxu1  ;;  %v1057_v40 = vpop.f32.mrb[33].mxu0 }
 0x211   :  { %v1088_v41 = vadd.f32 %v1087_v38, %v1086_v35  ;;  %v1089_v42 = vpop.f32.mrb[2].mxu1  ;;  %v1058_v43 = vadd.f32 %v1057_v40, %v1056_v36  ;;  %v1059_v44 = vpop.f32.mrb[34].mxu0  ;;  %v480_v35 = vld [vmem:[#allocation8 + $0x30] sm:$0xff] }
 0x212   :  { %v1090_v46 = vpop.f32.mrb[3].mxu1  ;;  %v1060_v48 = vpop.f32.mrb[35].mxu0 }
 0x213   :  { %v869_v49 = vadd.f32 %v1088_v41, %v484_v37  ;;  %v1091_v50 = vadd.f32 %v1090_v46, %v1089_v42  ;;  %v859_v51 = vadd.f32 %v1058_v43, %v474_v39  ;;  %v1061_v52 = vadd.f32 %v1060_v48, %v1059_v44  ;;  %v491_v41 = vld [vmem:[#allocation8 + $0x88] sm:$0xff]  ;;  %v481_v43 = vld [vmem:[#allocation8 + $0x38] sm:$0xff] }
 0x215   :  { %901 = vst [vmem:[#allocation8 + $0x50] sm:$0xff] %v869_v49  ;;  %v870_v53 = vadd.f32 %v1091_v50, %v485_v45  ;;  %891 = vst [vmem:[#allocation8] sm:$0xff] %v859_v51  ;;  %v860_v54 = vadd.f32 %v1061_v52, %v475_v47 }
 0x217   :  { %902 = vst [vmem:[#allocation8 + $0x58] sm:$0xff] %v870_v53  ;;  %v1092_v55 = vpop.f32.mrb[4].mxu1  ;;  %892 = vst [vmem:[#allocation8 + $0x8] sm:$0xff] %v860_v54  ;;  %v1062_v56 = vpop.f32.mrb[36].mxu0  ;;  %v492_v53 = vld [vmem:[#allocation8 + $0x90] sm:$0xff] }
 0x218   :  { %v1093_v58 = vpop.f32.mrb[5].mxu1  ;;  %v1063_v60 = vpop.f32.mrb[37].mxu0 }
 0x219   :  { %v1094_v61 = vadd.f32 %v1093_v58, %v1092_v55  ;;  %v1095_v62 = vpop.f32.mrb[6].mxu1  ;;  %v1064_v63 = vadd.f32 %v1063_v60, %v1062_v56  ;;  %v1065_v0 = vpop.f32.mrb[38].mxu0  ;;  %v482_v55 = vld [vmem:[#allocation8 + $0x40] sm:$0xff] }
 0x21a   :  { %v1096_v2 = vpop.f32.mrb[7].mxu1  ;;  %v1066_v4 = vpop.f32.mrb[39].mxu0 }
 0x21b   :  { %v871_v5 = vadd.f32 %v1094_v61, %v486_v57  ;;  %v1097_v6 = vadd.f32 %v1096_v2, %v1095_v62  ;;  %v861_v7 = vadd.f32 %v1064_v63, %v476_v59  ;;  %v1067_v8 = vadd.f32 %v1066_v4, %v1065_v0  ;;  %v493_v61 = vld [vmem:[#allocation8 + $0x98] sm:$0xff]  ;;  %v483_v63 = vld [vmem:[#allocation8 + $0x48] sm:$0xff] }
 0x21d   :  { %903 = vst [vmem:[#allocation8 + $0x60] sm:$0xff] %v871_v5  ;;  %v872_v9 = vadd.f32 %v1097_v6, %v487_v1  ;;  %893 = vst [vmem:[#allocation8 + $0x10] sm:$0xff] %v861_v7  ;;  %v862_v10 = vadd.f32 %v1067_v8, %v477_v3  ;;  %v494_v8 = vld [vmem:[#allocation8 + $0xa0] sm:$0xff] }
 0x21f   :  { %904 = vst [vmem:[#allocation8 + $0x68] sm:$0xff] %v872_v9  ;;  %v1098_v11 = vpop.f32.mrb[8].mxu1  ;;  %894 = vst [vmem:[#allocation8 + $0x18] sm:$0xff] %v862_v10  ;;  %v1068_v12 = vpop.f32.mrb[40].mxu0 }
 0x220   :  { %v1099_v14 = vpop.f32.mrb[9].mxu1  ;;  %v1069_v16 = vpop.f32.mrb[41].mxu0 }
 0x221   :  { %v1100_v17 = vadd.f32 %v1099_v14, %v1098_v11  ;;  %v1101_v18 = vpop.f32.mrb[10].mxu1  ;;  %v1070_v19 = vadd.f32 %v1069_v16, %v1068_v12  ;;  %v1071_v20 = vpop.f32.mrb[42].mxu0  ;;  %v495_v12 = vld [vmem:[#allocation8 + $0xa8] sm:$0xff] }
 0x222   :  { %v1102_v22 = vpop.f32.mrb[11].mxu1  ;;  %v1072_v24 = vpop.f32.mrb[43].mxu0 }
 0x223   :  { %v873_v25 = vadd.f32 %v1100_v17, %v488_v13  ;;  %v1103_v26 = vadd.f32 %v1102_v22, %v1101_v18  ;;  %v863_v27 = vadd.f32 %v1070_v19, %v478_v15  ;;  %v1073_v28 = vadd.f32 %v1072_v24, %v1071_v20  ;;  %v496_v18 = vld [vmem:[#allocation8 + $0xb0] sm:$0xff]  ;;  %v497_v22 = vld [vmem:[#allocation8 + $0xb8] sm:$0xff] }
 0x225   :  { %905 = vst [vmem:[#allocation8 + $0x70] sm:$0xff] %v873_v25  ;;  %v874_v29 = vadd.f32 %v1103_v26, %v489_v21  ;;  %895 = vst [vmem:[#allocation8 + $0x20] sm:$0xff] %v863_v27  ;;  %v864_v30 = vadd.f32 %v1073_v28, %v479_v23  ;;  %v498_v28 = vld [vmem:[#allocation8 + $0xc0] sm:$0xff] }
 0x227   :  { %906 = vst [vmem:[#allocation8 + $0x78] sm:$0xff] %v874_v29  ;;  %v1104_v31 = vpop.f32.mrb[12].mxu1  ;;  %896 = vst [vmem:[#allocation8 + $0x28] sm:$0xff] %v864_v30  ;;  %v1074_v32 = vpop.f32.mrb[44].mxu0 }
 0x228   :  { %v1105_v34 = vpop.f32.mrb[13].mxu1  ;;  %v1075_v36 = vpop.f32.mrb[45].mxu0 }
 0x229   :  { %v1106_v37 = vadd.f32 %v1105_v34, %v1104_v31  ;;  %v1107_v38 = vpop.f32.mrb[14].mxu1  ;;  %v1076_v39 = vadd.f32 %v1075_v36, %v1074_v32  ;;  %v1077_v40 = vpop.f32.mrb[46].mxu0  ;;  %v499_v32 = vld [vmem:[#allocation8 + $0xc8] sm:$0xff] }
 0x22a   :  { %v1108_v42 = vpop.f32.mrb[15].mxu1  ;;  %v1078_v44 = vpop.f32.mrb[47].mxu0 }
 0x22b   :  { %v875_v45 = vadd.f32 %v1106_v37, %v490_v33  ;;  %v1109_v46 = vadd.f32 %v1108_v42, %v1107_v38  ;;  %v865_v47 = vadd.f32 %v1076_v39, %v480_v35  ;;  %v1079_v48 = vadd.f32 %v1078_v44, %v1077_v40  ;;  %v500_v38 = vld [vmem:[#allocation8 + $0xd0] sm:$0xff]  ;;  %v501_v42 = vld [vmem:[#allocation8 + $0xd8] sm:$0xff] }
 0x22d   :  { %907 = vst [vmem:[#allocation8 + $0x80] sm:$0xff] %v875_v45  ;;  %v876_v49 = vadd.f32 %v1109_v46, %v491_v41  ;;  %897 = vst [vmem:[#allocation8 + $0x30] sm:$0xff] %v865_v47  ;;  %v866_v50 = vadd.f32 %v1079_v48, %v481_v43  ;;  %v502_v48 = vld [vmem:[#allocation8 + $0xe0] sm:$0xff] }
 0x22f   :  { %908 = vst [vmem:[#allocation8 + $0x88] sm:$0xff] %v876_v49  ;;  %v1110_v51 = vpop.f32.mrb[16].mxu1  ;;  %898 = vst [vmem:[#allocation8 + $0x38] sm:$0xff] %v866_v50  ;;  %v1080_v52 = vpop.f32.mrb[48].mxu0 }
 0x230   :  { %v1111_v54 = vpop.f32.mrb[17].mxu1  ;;  %v1081_v56 = vpop.f32.mrb[49].mxu0 }
 0x231   :  { %v1112_v57 = vadd.f32 %v1111_v54, %v1110_v51  ;;  %v1113_v58 = vpop.f32.mrb[18].mxu1  ;;  %v1082_v59 = vadd.f32 %v1081_v56, %v1080_v52  ;;  %v1083_v60 = vpop.f32.mrb[50].mxu0  ;;  %v503_v52 = vld [vmem:[#allocation8 + $0xe8] sm:$0xff] }
 0x232   :  { %v1114_v62 = vpop.f32.mrb[19].mxu1  ;;  %v1084_v0 = vpop.f32.mrb[51].mxu0 }
 0x233   :  { %v877_v1 = vadd.f32 %v1112_v57, %v492_v53  ;;  %v1115_v2 = vadd.f32 %v1114_v62, %v1113_v58  ;;  %v867_v3 = vadd.f32 %v1082_v59, %v482_v55  ;;  %v1085_v4 = vadd.f32 %v1084_v0, %v1083_v60  ;;  %v504_v58 = vld [vmem:[#allocation8 + $0xf0] sm:$0xff]  ;;  %v505_v62 = vld [vmem:[#allocation8 + $0xf8] sm:$0xff] }
 0x235   :  { %909 = vst [vmem:[#allocation8 + $0x90] sm:$0xff] %v877_v1  ;;  %v878_v5 = vadd.f32 %v1115_v2, %v493_v61  ;;  %899 = vst [vmem:[#allocation8 + $0x40] sm:$0xff] %v867_v3  ;;  %v868_v6 = vadd.f32 %v1085_v4, %v483_v63 }
 0x237   :  { %910 = vst [vmem:[#allocation8 + $0x98] sm:$0xff] %v878_v5  ;;  %v1116_v7 = vpop.f32.mrb[20].mxu1  ;;  %900 = vst [vmem:[#allocation8 + $0x48] sm:$0xff] %v868_v6 }
 0x238   :  { %v1117_v9 = vpop.f32.mrb[21].mxu1 }
 0x239   :  { %v1118_v10 = vadd.f32 %v1117_v9, %v1116_v7  ;;  %v1119_v11 = vpop.f32.mrb[22].mxu1 }
 0x23a   :  { %v1120_v13 = vpop.f32.mrb[23].mxu1 }
 0x23b   :  { %v879_v14 = vadd.f32 %v1118_v10, %v494_v8  ;;  %v1121_v15 = vadd.f32 %v1120_v13, %v1119_v11 }
 0x23d   :  { %911 = vst [vmem:[#allocation8 + $0xa0] sm:$0xff] %v879_v14  ;;  %v880_v16 = vadd.f32 %v1121_v15, %v495_v12 }
 0x23f   :  { %912 = vst [vmem:[#allocation8 + $0xa8] sm:$0xff] %v880_v16  ;;  %v1122_v17 = vpop.f32.mrb[24].mxu1 }
 0x240   :  { %v1123_v19 = vpop.f32.mrb[25].mxu1 }
 0x241   :  { %v1124_v20 = vadd.f32 %v1123_v19, %v1122_v17  ;;  %v1125_v21 = vpop.f32.mrb[26].mxu1 }
 0x242   :  { %v1126_v23 = vpop.f32.mrb[27].mxu1 }
 0x243   :  { %v881_v24 = vadd.f32 %v1124_v20, %v496_v18  ;;  %v1127_v25 = vadd.f32 %v1126_v23, %v1125_v21 }
 0x245   :  { %913 = vst [vmem:[#allocation8 + $0xb0] sm:$0xff] %v881_v24  ;;  %v882_v26 = vadd.f32 %v1127_v25, %v497_v22 }
 0x247   :  { %914 = vst [vmem:[#allocation8 + $0xb8] sm:$0xff] %v882_v26  ;;  %v1128_v27 = vpop.f32.mrb[28].mxu1 }
 0x248   :  { %v1129_v29 = vpop.f32.mrb[29].mxu1 }
 0x249   :  { %v1130_v30 = vadd.f32 %v1129_v29, %v1128_v27  ;;  %v1131_v31 = vpop.f32.mrb[30].mxu1 }
 0x24a   :  { %v1132_v33 = vpop.f32.mrb[31].mxu1 }
 0x24b   :  { %v883_v34 = vadd.f32 %v1130_v30, %v498_v28  ;;  %v1133_v35 = vadd.f32 %v1132_v33, %v1131_v31 }
 0x24d   :  { %915 = vst [vmem:[#allocation8 + $0xc0] sm:$0xff] %v883_v34  ;;  %v884_v36 = vadd.f32 %v1133_v35, %v499_v32 }
 0x24f   :  { %916 = vst [vmem:[#allocation8 + $0xc8] sm:$0xff] %v884_v36  ;;  %v1134_v37 = vpop.f32.mrb[32].mxu1 }
 0x250   :  { %v1135_v39 = vpop.f32.mrb[33].mxu1 }
 0x251   :  { %v1136_v40 = vadd.f32 %v1135_v39, %v1134_v37  ;;  %v1137_v41 = vpop.f32.mrb[34].mxu1 }
 0x252   :  { %v1138_v43 = vpop.f32.mrb[35].mxu1 }
 0x253   :  { %v885_v44 = vadd.f32 %v1136_v40, %v500_v38  ;;  %v1139_v45 = vadd.f32 %v1138_v43, %v1137_v41 }
 0x255   :  { %917 = vst [vmem:[#allocation8 + $0xd0] sm:$0xff] %v885_v44  ;;  %v886_v46 = vadd.f32 %v1139_v45, %v501_v42 }
 0x257   :  { %918 = vst [vmem:[#allocation8 + $0xd8] sm:$0xff] %v886_v46  ;;  %v1140_v47 = vpop.f32.mrb[36].mxu1 }
 0x258   :  { %v1141_v49 = vpop.f32.mrb[37].mxu1 }
 0x259   :  { %v1142_v50 = vadd.f32 %v1141_v49, %v1140_v47  ;;  %v1143_v51 = vpop.f32.mrb[38].mxu1 }
 0x25a   :  { %v1144_v53 = vpop.f32.mrb[39].mxu1 }
 0x25b   :  { %v887_v54 = vadd.f32 %v1142_v50, %v502_v48  ;;  %v1145_v55 = vadd.f32 %v1144_v53, %v1143_v51 }
 0x25d   :  { %919 = vst [vmem:[#allocation8 + $0xe0] sm:$0xff] %v887_v54  ;;  %v888_v56 = vadd.f32 %v1145_v55, %v503_v52 }
 0x25f   :  { %920 = vst [vmem:[#allocation8 + $0xe8] sm:$0xff] %v888_v56  ;;  %v1146_v57 = vpop.f32.mrb[40].mxu1 }
 0x260   :  { %v1147_v59 = vpop.f32.mrb[41].mxu1 }
 0x261   :  { %v1148_v60 = vadd.f32 %v1147_v59, %v1146_v57  ;;  %v1149_v61 = vpop.f32.mrb[42].mxu1 }
 0x262   :  { %v1150_v63 = vpop.f32.mrb[43].mxu1 }
 0x263   :  { %v889_v0 = vadd.f32 %v1148_v60, %v504_v58  ;;  %v1151_v1 = vadd.f32 %v1150_v63, %v1149_v61 }
 0x265   :  { %921 = vst [vmem:[#allocation8 + $0xf0] sm:$0xff] %v889_v0  ;;  %v890_v2 = vadd.f32 %v1151_v1, %v505_v62 }
 0x267   :  { %922 = vst [vmem:[#allocation8 + $0xf8] sm:$0xff] %v890_v2 }
 0x268 PF:  { %s1327_s1 = smov [#allocation8]  }
 0x269   :  { %s928_s4 = sshll.u32 %s1327_s1, 4  ;;  %s929_s4 = int_to_ptr.vmem [resolvable:$true] %s928_s4 }
 0x26a   :  { %s1298_s25 = scalar_lea.vmem %s929_s4, 4096  ;;  %p1303_p1 = scmp.lt.s32.totalorder %s929_s4, %s929_s4 }
 0x26b   :  { %p1299_p0 = scmp.ne.s32.totalorder %s929_s4, %s1298_s25  ;;  %p1304_p2 = scmp.lt.s32.totalorder %s1298_s25, %s1298_s25 }
 0x26d   :  { %p1305_p3 = por %p1304_p2, %p1303_p1 }
 0x26f   :  { %p1306_p4 = pnand %p1305_p3, %p1299_p0 }
 0x271   :  { %1309 = shalt.err (!%p1306_p4)
}
 0x272   :  { %s1310_s28 = scalar_lea.hbm %s1451_s6, 4096 }
 0x273   :  { %p1311_p5 = scmp.ne.s32.totalorder %s1451_s6, %s1310_s28  ;;  %p1314_p6 = scmp.lt.u32.totalorder %s1310_s28, %s1451_s6 }
 0x275   :  { %p1316_p7 = pnand %p1314_p6, %p1311_p5 }
 0x277   :  { %1319 = shalt.err (!%p1316_p7)
}
 0x278   :  { %934 = dma.vmem_to_hbm [thread:$0]  %s929_s4, 4096, %s1451_s6, [#allocation7], %s1325_s12, %s1325_s12, %s1326_s13  }
 0x279   :  { %1322 = dma.done.wait [#allocation7], 4096  }
 0x27a   :  { %1323 = vsyncadd [#allocation7], 4294963200 }
 0x27b   :  { %938 = vsyncpa [#allocation6], 1 }
 0x27c   :  { %939 = vsyncpa [#allocation7], 1 }

</bundles_post_ra>
